<compile_context>
chip_gen: v7x
topology: tpu7x:2x2x1
jax: 0.10.0
libtpu: 0.0.40
codegen_flags: <defaults>
</compile_context>

<pallas_src>
import functools

import jax
import jax.numpy as jnp
from jax.experimental import pallas as pl
from jax.experimental.pallas import tpu as pltpu

_EPS = 1e-12                      # F.normalize's default eps
_BLOCK_BYTES_TARGET = 2 << 20     # ~2 MiB per input block (x2 inputs x2 buffers = 8 MiB)
_VMEM_LIMIT_BYTES = 32 << 20      # safe scoped-VMEM limit on v5e / v6e / v7x
_NSPLIT = 2                       # leading "parallel" axis (v7x has 2 TensorCores)


def _sublane_multiple(dtype):
    itemsize = jnp.dtype(dtype).itemsize
    return max(8, 32 // max(itemsize, 1))     # 8 f32, 16 bf16, 32 int8/fp8


def _loss_terms(a, f, loss_type):
    """f32 loss terms.  MSE/MAE -> (rows, D) elementwise terms whose full sum
    is the batch-loss numerator; Cosine -> (rows, 1) per-row loss."""
    if loss_type == "MSE":
        diff = a - f
        return diff * diff
    if loss_type == "MAE":
        return jnp.abs(a - f)
    # Cosine: rsqrt of eps^2-clamped squared norms == F.normalize's
    # max(||x||, eps) clamp, but issues on the otherwise-idle EUP slot.
    eps2 = jnp.float32(_EPS * _EPS)
    aa = jnp.sum(a * a, axis=-1, keepdims=True)
    ff = jnp.sum(f * f, axis=-1, keepdims=True)
    dot = jnp.sum(a * f, axis=-1, keepdims=True)
    inv = jax.lax.rsqrt(jnp.maximum(aa, eps2)) * jax.lax.rsqrt(jnp.maximum(ff, eps2))
    return 1.0 - dot * inv


def _loss_single_kernel(a_ref, f_ref, o_ref, *, loss_type, bs):
    """Whole batch in one block: reduce directly, scale, write (1,1)."""
    a = a_ref[...].astype(jnp.float32)
    f = f_ref[...].astype(jnp.float32)
    t = _loss_terms(a, f, loss_type)
    o_ref[...] = jnp.sum(t, keepdims=True) * jnp.float32(1.0 / bs)


def _loss_tiled_kernel(a_ref, f_ref, o_ref, acc_ref, *, loss_type, bs, tm):
    """grid = (split ["parallel"], row-tile step ["arbitrary" reduction]).

    Each split owns a contiguous range of row tiles, accumulates 2-D partial
    sums into a resident f32 VMEM scratch (VPU adds only), and writes its
    pre-scaled partial into its own (8,128) output tile at the last step.
    """
    c = pl.program_id(0)
    i = pl.program_id(1)
    steps = pl.num_programs(1)
    row0 = (c * steps + i) * tm          # first logical row of this tile

    @pl.when(i == 0)
    def _init():
        acc_ref[...] = jnp.zeros_like(acc_ref)

    a = a_ref[...].astype(jnp.float32)
    f = f_ref[...].astype(jnp.float32)
    t = _loss_terms(a, f, loss_type)     # (tm, D) or (tm, 1)

    def _accumulate(vals):
        # Leading-dim reshape is layout-preserving; sum over row groups of 8
        # is pure VPU adds into the resident (8, cols) scratch.  The single
        # cross-lane/sublane reduce happens only in the finalize.
        cols = vals.shape[-1]
        acc_ref[...] += jnp.sum(vals.reshape(tm // 8, 8, cols), axis=0)

    is_tail = row0 + tm > bs             # only the ragged tail tile needs a mask

    @pl.when(jnp.logical_not(is_tail))
    def _full_tile():
        _accumulate(t)

    @pl.when(is_tail)
    def _tail_tile():
        # where (not multiply): rows past bs hold unspecified data that could
        # yield NaN/Inf terms; select keeps them out of the accumulator.
        row_ids = row0 + jax.lax.broadcasted_iota(jnp.int32, (tm, 1), 0)
        _accumulate(jnp.where(row_ids < bs, t, jnp.float32(0.0)))

    @pl.when(i == steps - 1)
    def _finalize():
        partial = jnp.sum(acc_ref[...], keepdims=True) * jnp.float32(1.0 / bs)
        o_ref[...] = jnp.broadcast_to(partial, o_ref.shape)


def construct_loss(adapted_feat, feats_stacked, loss_type, *, row_tile=None):
    """Scalar construct loss between (bs, D) adapted features and teacher feats."""
    if loss_type not in ("MSE", "MAE", "Cosine"):
        raise ValueError(f"loss function {loss_type} not supported")
    assert adapted_feat.shape == feats_stacked.shape and adapted_feat.ndim == 2
    bs, d = adapted_feat.shape

    itemsize = max(jnp.dtype(adapted_feat.dtype).itemsize,
                   jnp.dtype(feats_stacked.dtype).itemsize)
    sub = _sublane_multiple(adapted_feat.dtype)
    if row_tile is None:
        # VMEM-budgeted row tile: >=256 rows when D allows, sublane-aligned.
        row_tile = max(_BLOCK_BYTES_TARGET // max(d * itemsize, 1), 256)
    tm = max((row_tile // sub) * sub, sub)

    bytes_accessed = bs * d * (jnp.dtype(adapted_feat.dtype).itemsize
                               + jnp.dtype(feats_stacked.dtype).itemsize)
    cost = pl.CostEstimate(
        flops=4 * bs * d,
        transcendentals=2 * bs if loss_type == "Cosine" else 0,
        bytes_accessed=bytes_accessed)

    if bs <= tm:
        # Single fused block: no padding, no masking, one grid step.
        out = pl.pallas_call(
            functools.partial(_loss_single_kernel, loss_type=loss_type, bs=bs),
            out_shape=jax.ShapeDtypeStruct((1, 1), jnp.float32),
            grid=(1,),
            in_specs=[pl.BlockSpec((bs, d), lambda i: (0, 0)),
                      pl.BlockSpec((bs, d), lambda i: (0, 0))],
            out_specs=pl.BlockSpec((1, 1), lambda i: (0, 0)),
            compiler_params=pltpu.CompilerParams(
                dimension_semantics=("arbitrary",),
                vmem_limit_bytes=_VMEM_LIMIT_BYTES),
            cost_estimate=cost,
        )(adapted_feat, feats_stacked)
        return out[0, 0]

    # Tiled, no-pad path: contiguous row-tile ranges per split; ragged tail
    # masked in-kernel; clamped duplicate tiles (odd tile counts) are fully
    # masked by the same row-id check.
    n_tiles = pl.cdiv(bs, tm)
    steps = pl.cdiv(n_tiles, _NSPLIT)

    def in_map(c, i):
        return (jnp.minimum(c * steps + i, n_tiles - 1), 0)   # keep DMA in bounds

    acc_cols = d if loss_type in ("MSE", "MAE") else 1
    out = pl.pallas_call(
        functools.partial(_loss_tiled_kernel, loss_type=loss_type, bs=bs, tm=tm),
        out_shape=jax.ShapeDtypeStruct((_NSPLIT * 8, 128), jnp.float32),
        grid=(_NSPLIT, steps),
        in_specs=[pl.BlockSpec((tm, d), in_map),
                  pl.BlockSpec((tm, d), in_map)],
        out_specs=pl.BlockSpec((8, 128), lambda c, i: (c, 0)),
        scratch_shapes=[pltpu.VMEM((8, acc_cols), jnp.float32)],
        compiler_params=pltpu.CompilerParams(
            dimension_semantics=("parallel", "arbitrary"),
            vmem_limit_bytes=_VMEM_LIMIT_BYTES),
        cost_estimate=cost,
    )(adapted_feat, feats_stacked)
    # One pre-scaled partial per split (row 0 of each (8,128) output tile).
    return jnp.sum(out[::8, 0])


def set_criterion_forward(outputs, feats, construct_func):
    """Mirrors SetCriterion.forward: construct loss + constant class_error.

    `feats` may be a Python list of (D,) vectors (module semantics, stacked
    once here) or an already-stacked (bs, D) array (preferred: avoids a
    per-step concat of bs tiny HBM copies).
    """
    adapted_feat = outputs["adapted_feat"]
    feats_stacked = feats if isinstance(feats, jax.Array) else jnp.stack(feats)
    return {
        "loss_construct": construct_loss(adapted_feat, feats_stacked,
                                         construct_func),
        "class_error": jnp.array(-1, dtype=jnp.int32),
    }


def _construct_loss_ref(adapted, feats_stacked, loss_type):
    a = adapted.astype(jnp.float32)
    f = feats_stacked.astype(jnp.float32)
    if loss_type == "MSE":
        return jnp.mean(jnp.sum((a - f) ** 2, axis=-1))
    if loss_type == "MAE":
        return jnp.mean(jnp.sum(jnp.abs(a - f), axis=-1))
    an = a / jnp.maximum(jnp.linalg.norm(a, axis=-1, keepdims=True), _EPS)
    fn = f / jnp.maximum(jnp.linalg.norm(f, axis=-1, keepdims=True), _EPS)
    return jnp.mean(1.0 - jnp.sum(an * fn, axis=-1))


if __name__ == "__main__":
    key = jax.random.PRNGKey(0)
    ka, kf, kb = jax.random.split(key, 3)

    # Small shapes consistent with the module: feats is a list of bs feature
    # vectors of dim D; adapted_feat is (bs, D).
    bs, d = 8, 256
    adapted_feat = jax.random.normal(ka, (bs, d), jnp.float32)
    feats = [jax.random.normal(jax.random.fold_in(kf, i), (d,), jnp.float32)
             for i in range(bs)]
    feats_stacked = jnp.stack(feats)
    outputs = {"adapted_feat": adapted_feat}

    for loss_type in ("MSE", "MAE", "Cosine"):
        losses = set_criterion_forward(outputs, feats, loss_type)
        val = jax.block_until_ready(losses["loss_construct"])
        ref = _construct_loss_ref(adapted_feat, feats_stacked, loss_type)
        assert jnp.allclose(val, ref, atol=1e-4, rtol=1e-4), (loss_type, val, ref)
        assert int(losses["class_error"]) == -1

    # Exercise the tiled / tail-masked / 2-way-split path at small size by
    # overriding the row tile (bs=20, tm=8 -> 3 tiles, split across 2, ragged
    # tail + clamped duplicate tile).
    bs2 = 20
    a2 = jax.random.normal(jax.random.fold_in(kb, 0), (bs2, d), jnp.float32)
    f2 = jax.random.normal(jax.random.fold_in(kb, 1), (bs2, d), jnp.float32)
    for loss_type in ("MSE", "MAE", "Cosine"):
        val = jax.block_until_ready(construct_loss(a2, f2, loss_type, row_tile=8))
        ref = _construct_loss_ref(a2, f2, loss_type)
        assert jnp.allclose(val, ref, atol=1e-4, rtol=1e-4), (loss_type, val, ref)

    # bf16 inputs stream as bf16 through HBM; f32 cast happens in-kernel.
    a3 = a2.astype(jnp.bfloat16)
    f3 = f2.astype(jnp.bfloat16)
    val = jax.block_until_ready(construct_loss(a3, f3, "MSE"))
    ref = _construct_loss_ref(a3, f3, "MSE")
    assert jnp.allclose(val, ref, atol=1e-3, rtol=1e-3), (val, ref)

    print("KERNEL_OK")
</pallas_src>

<mosaic_0001>
module attributes {stable_mosaic.version = 11 : i64} {
  func.func @_loss_single_kernel(%arg0: i32, %arg1: memref<8x256xf32, #tpu.memory_space<vmem>>, %arg2: memref<8x256xf32, #tpu.memory_space<vmem>>, %arg3: memref<1x1xf32, #tpu.memory_space<vmem>>) attributes {dimension_semantics = [#tpu.dimension_semantics<arbitrary>], iteration_bounds = array<i64: 1>, scalar_prefetch = 0 : i64, scratch_operands = 0 : i64, tpu.core_type = #tpu.core_type<tc>, window_params = [{pipeline_mode = #tpu.pipeline_mode<synchronous>, transform_indices = @transform_0, window_bounds = array<i64: 8, 256>}, {pipeline_mode = #tpu.pipeline_mode<synchronous>, transform_indices = @transform_1, window_bounds = array<i64: 8, 256>}, {pipeline_mode = #tpu.pipeline_mode<synchronous>, transform_indices = @transform_2, window_bounds = array<i64: 1, 1>}]} {
    %c0 = arith.constant 0 : index
    %c0_0 = arith.constant 0 : index
    %0 = vector.load %arg1[%c0, %c0_0] : memref<8x256xf32, #tpu.memory_space<vmem>>, vector<8x256xf32>
    %c0_1 = arith.constant 0 : index
    %c0_2 = arith.constant 0 : index
    %1 = vector.load %arg2[%c0_1, %c0_2] : memref<8x256xf32, #tpu.memory_space<vmem>>, vector<8x256xf32>
    %2 = arith.subf %0, %1 : vector<8x256xf32>
    %3 = arith.mulf %2, %2 : vector<8x256xf32>
    %4 = vector.shape_cast %3 : vector<8x256xf32> to vector<1x8x256xf32>
    %cst = arith.constant dense<0.000000e+00> : vector<1xf32>
    %5 = vector.multi_reduction <add>, %4, %cst [1, 2] : vector<1x8x256xf32> to vector<1xf32>
    %6 = vector.shape_cast %5 : vector<1xf32> to vector<1x1x1xf32>
    %7 = vector.extract %6[0, 0, 0] : f32 from vector<1x1x1xf32>
    %8 = vector.broadcast %7 : f32 to vector<1x1xf32>
    %cst_3 = arith.constant 1.250000e-01 : f32
    %9 = vector.broadcast %cst_3 : f32 to vector<1x1xf32>
    %10 = arith.mulf %8, %9 : vector<1x1xf32>
    %c0_4 = arith.constant 0 : index
    %c0_5 = arith.constant 0 : index
    %11 = vector.load %arg3[%c0_4, %c0_5] : memref<1x1xf32, #tpu.memory_space<vmem>>, vector<1x1xf32>
    tpu.vector_store %arg3[%c0_4, %c0_5], %10 {strides = array<i32>} : memref<1x1xf32, #tpu.memory_space<vmem>>, vector<1x1xf32>,
    return
  }
  func.func @transform_0(%arg0: i32) -> (i32, i32) {
    %c0_i32 = arith.constant 0 : i32
    %c0_i32_0 = arith.constant 0 : i32
    %c0_i32_1 = arith.constant 0 : i32
    return %c0_i32, %c0_i32_0 : i32, i32
  }
  func.func @transform_1(%arg0: i32) -> (i32, i32) {
    %c0_i32 = arith.constant 0 : i32
    %c0_i32_0 = arith.constant 0 : i32
    %c0_i32_1 = arith.constant 0 : i32
    return %c0_i32, %c0_i32_0 : i32, i32
  }
  func.func @transform_2(%arg0: i32) -> (i32, i32) {
    %c0_i32 = arith.constant 0 : i32
    %c0_i32_0 = arith.constant 0 : i32
    %c0_i32_1 = arith.constant 0 : i32
    return %c0_i32, %c0_i32_0 : i32, i32
  }
}

</mosaic_0001>

<bundles_post_ra>
// kernel: tpu_custom_call.1
= control target key start
LH: loop header
LB: loop body
LE: loop exit
PB: predicated region body
PF: predicated region fallthrough
CT: control target
= control target key end

     0   :  { %7 = vsyncpa [#allocation3], 0  ;;  %s205_s0 = inlined_call_operand.hbm [shape: f32[8,256], index: 0, kind: input, shape index: {}]   ;;  %s206_s1 = inlined_call_operand.hbm [shape: f32[8,256], index: 1, kind: input, shape index: {}]   ;;  %s207_s2 = inlined_call_operand.hbm [shape: f32[1,1], index: 2, kind: output, shape index: {}]  }
   0x1   :  { %8 = vsyncpa [#allocation6], 0 }
   0x2   :  { %9 = vsyncpa [#allocation4], 0  ;;  %s151_s9 = smov [#allocation2]   ;;  %s152_s11 = smov [#allocation5]  }
   0x3   :  { %s16_s10 = sshll.u32 %s151_s9, 4  ;;  %s26_s12 = sshll.u32 %s152_s11, 4  ;;  %s17_s10 = int_to_ptr.vmem [resolvable:$true] %s16_s10  ;;  %s27_s12 = int_to_ptr.vmem [resolvable:$true] %s26_s12 }
   0x4   :  { %s79_s15 = scalar_lea.hbm %s205_s0, 256 }
   0x5   :  { %p80_p0 = scmp.ne.s32.totalorder %s205_s0, %s79_s15  ;;  %p83_p1 = scmp.lt.u32.totalorder %s79_s15, %s205_s0 }
   0x7   :  { %p85_p2 = pnand %p83_p1, %p80_p0 }
   0x9   :  { %88 = shalt.err (!%p85_p2)
}
   0xa   :  { %s89_s20 = scalar_lea.vmem %s17_s10, 256  ;;  %p94_p4 = scmp.lt.s32.totalorder %s17_s10, %s17_s10 }
   0xb   :  { %p90_p3 = scmp.ne.s32.totalorder %s17_s10, %s89_s20  ;;  %p95_p5 = scmp.lt.s32.totalorder %s89_s20, %s89_s20 }
   0xd   :  { %p96_p6 = por %p95_p5, %p94_p4 }
   0xf   :  { %p97_p7 = pnand %p96_p6, %p90_p3 }
  0x11   :  { %100 = shalt.err (!%p97_p7)
}
  0x12   :  { %19 = dma.hbm_to_vmem [thread:$0]  %s205_s0, 256, %s17_s10, [#allocation3]  }
  0x13   :  { %s101_s25 = scalar_lea.hbm %s206_s1, 256 }
  0x14   :  { %p102_p8 = scmp.ne.s32.totalorder %s206_s1, %s101_s25  ;;  %p105_p9 = scmp.lt.u32.totalorder %s101_s25, %s206_s1 }
  0x16   :  { %p107_p10 = pnand %p105_p9, %p102_p8 }
  0x18   :  { %110 = shalt.err (!%p107_p10)
}
  0x19   :  { %s111_s30 = scalar_lea.vmem %s27_s12, 256  ;;  %p116_p12 = scmp.lt.s32.totalorder %s27_s12, %s27_s12 }
  0x1a   :  { %p112_p11 = scmp.ne.s32.totalorder %s27_s12, %s111_s30  ;;  %p117_p13 = scmp.lt.s32.totalorder %s111_s30, %s111_s30 }
  0x1c   :  { %p118_p0 = por %p117_p13, %p116_p12 }
  0x1e   :  { %p119_p1 = pnand %p118_p0, %p112_p11 }
  0x20   :  { %122 = shalt.err (!%p119_p1)
}
  0x21   :  { %29 = dma.hbm_to_vmem [thread:$0]  %s206_s1, 256, %s27_s12, [#allocation6]  }
  0x22   :  { %145 = dma.done.wait [#allocation3], 256  }
  0x23   :  { %146 = vsyncadd [#allocation3], 4294967040 }
  0x24   :  { %147 = dma.done.wait [#allocation6], 256  }
  0x25   :  { %148 = vsyncadd [#allocation6], 4294967040  ;;  %v36_v0 = vld [vmem:[#allocation2] sm:$0xff]  ;;  %v37_v1 = vld [vmem:[#allocation2 + $0x8] sm:$0xff]  ;;  %s153_s1 = smov [#allocation7]   ;;  %vm56_vm0 = vcmask 0  }
  0x26   :  { %v38_v2 = vld [vmem:[#allocation5] sm:$0xff]  ;;  %v39_v3 = vld [vmem:[#allocation5 + $0x8] sm:$0xff]  ;;  %s64_s4 = sshll.u32 %s153_s1, 4  ;;  %s65_s4 = int_to_ptr.vmem [resolvable:$true] %s64_s4 }
  0x27   :  { %v40_v4 = vsub.f32 %v36_v0, %v38_v2  ;;  %v41_v5 = vsub.f32 %v37_v1, %v39_v3  ;;  %s123_s6 = scalar_lea.vmem %s65_s4, 16  ;;  %s127_s7 = scalar_lea.vmem %s65_s4, 32 }
  0x28   :  { %p124_p2 = scmp.ne.s32.totalorder %s65_s4, %s123_s6  ;;  %p128_p3 = scmp.lt.s32.totalorder %s65_s4, %s65_s4 }
  0x29   :  { %v42_v6 = vmul.f32 %v40_v4, %v40_v4  ;;  %v43_v7 = vmul.f32 %v41_v5, %v41_v5  ;;  %p129_p4 = scmp.lt.s32.totalorder %s127_s7, %s123_s6 }
  0x2b   :  { %v44_v8 = vadd.f32 %v43_v7, %v42_v6  ;;  %p130_p5 = por %p129_p4, %p128_p3 }
  0x2d   :  { %45 = vadd.xlane.f32.xlu0 %v44_v8  ;;  %p131_p6 = pnand %p130_p5, %p124_p2 }
  0xba   :  { %v46_v9 = vpop.xlane.xlu0 %45 }
  0xbb   :  { %v47_v10 = vrot.slane %v46_v9, 4 }
  0xbd   :  { %v48_v11 = vadd.f32 %v47_v10, %v46_v9 }
  0xbf   :  { %v49_v12 = vrot.slane %v48_v11, 2 }
  0xc1   :  { %v50_v13 = vadd.f32 %v49_v12, %v48_v11 }
  0xc3   :  { %v51_v14 = vrot.slane %v50_v13, 1 }
  0xc5   :  { %v52_v15 = vadd.f32 %v51_v14, %v50_v13 }
  0xc7   :  { %74 = vpush %v52_v15 }
  0xf8   :  { %s75_s5 = spop %74 }
  0xf9   :  { %v54_v16 = vstv %s75_s5 }
  0xfa   :  { %v55_v17 = vmul.f32 0.125, %v54_v16 }
  0xfc   :  { %57 = vst.msk [vmem:[#allocation7] sm:$0x1] %vm56_vm0, %v55_v17 }
  0xfd   :  { %134 = shalt.err (!%p131_p6)
}
  0xfe   :  { %s135_s10 = scalar_lea.hbm %s207_s2, 16 }
  0xff   :  { %p136_p7 = scmp.ne.s32.totalorder %s207_s2, %s135_s10  ;;  %p139_p8 = scmp.lt.u32.totalorder %s135_s10, %s207_s2 }
 0x101   :  { %p141_p9 = pnand %p139_p8, %p136_p7 }
 0x103   :  { %144 = shalt.err (!%p141_p9)
}
 0x104   :  { %67 = dma.vmem_to_hbm [thread:$0]  %s65_s4, 16, %s207_s2, [#allocation4]  }
 0x105   :  { %149 = dma.done.wait [#allocation4], 16  }
 0x106   :  { %150 = vsyncadd [#allocation4], 4294967280 }
 0x107   :  { %71 = vsyncpa [#allocation3], 1 }
 0x108   :  { %72 = vsyncpa [#allocation6], 1 }
 0x109   :  { %73 = vsyncpa [#allocation4], 1 }

</bundles_post_ra>
